<compile_context>
chip_gen: v5e
topology: v5e:2x2
jax: 0.10.0
libtpu: 0.0.40
codegen_flags: <defaults>
</compile_context>

<pallas_src>
import functools

import jax
import jax.numpy as jnp
from jax.experimental import pallas as pl
from jax.experimental.pallas import tpu as pltpu


def _proj_kernel(wt_ref, b_ref, x_ref, o_ref, *, compute_dtype):
    # wt_ref: (Cout, Cin)   b_ref: (Cout, 1)
    # x_ref : (Cin, tt)     o_ref: (Cout, tt)   -- time (lane) axis last
    x_blk = x_ref[...]
    if x_blk.dtype != compute_dtype:
        # In-kernel operand cast: no extra HBM pass (review item: bf16 path).
        x_blk = x_blk.astype(compute_dtype)
    acc = jnp.dot(wt_ref[...], x_blk, preferred_element_type=jnp.float32)
    o_ref[...] = (acc + b_ref[...]).astype(o_ref.dtype)


def _vmem_capacity_bytes():
    """Physical per-core VMEM; conservative fallback if the query fails."""
    try:
        return int(pltpu.get_tpu_info().vmem_capacity_bytes)
    except Exception:
        return 64 * 1024 * 1024  # v7x-sized worst case


def conversion_forward(x, w, b, *, tt=8192, compute_dtype=None):
    """Per-frame affine projection in channels-first layout.

    x: [B, Cin, T]   (PyTorch conv-style NCT layout)
    w: [Cin, Cout]
    b: [Cout]
    returns y: [B, Cout, T] with y[b,:,t] = w.T @ x[b,:,t] + b
    """
    B, Cin, T = x.shape
    Cout = w.shape[1]
    out_dtype = x.dtype

    cdt = jnp.dtype(compute_dtype) if compute_dtype is not None else jnp.dtype(x.dtype)
    # Only the tiny weights/bias are re-materialized; x is never copied in HBM.
    wt_c = w.T.astype(cdt)                         # (Cout, Cin), MXU LHS
    b2 = b.reshape(Cout, 1).astype(jnp.float32)    # broadcast over lanes

    it_in = jnp.dtype(x.dtype).itemsize
    it_out = jnp.dtype(out_dtype).itemsize
    it_w = jnp.dtype(cdt).itemsize

    # Generation-aware VMEM budget (~75% of physical per-core VMEM:
    # ~48 MiB on v7x, ~96 MiB on v5e/v6e).
    budget = int(_vmem_capacity_bytes() * 0.75)

    # Per-frame VMEM cost: double-buffered x / y blocks + f32 accumulator and
    # bias-add temp (review item: acc was previously uncounted).
    per_frame = 2 * (Cin * it_in + Cout * it_out) + 2 * Cout * 4
    fixed = 2 * (Cout * Cin * it_w + Cout * 4)
    tt_max = max(128, ((budget - fixed) // per_frame) // 128 * 128)
    tt_req = min(tt, tt_max)

    # No padding / no output slice: Pallas masks the partial last time block.
    tt_eff = T if T <= tt_req else tt_req          # full-dim block or 128-multiple
    num_t = pl.cdiv(T, tt_eff)
    grid = (num_t, B)                              # larger parallel axis first (v7x)

    # Raise the scoped-VMEM limit only when the smallest default scope
    # (16 MiB, v5e) would be exceeded; always cap below physical VMEM.
    need_hdrm = int((per_frame * tt_eff + fixed) * 1.25)
    vmem_limit = min(need_hdrm, budget) if need_hdrm > 16 * 1024 * 1024 else None

    cost = pl.CostEstimate(
        flops=2 * B * Cout * Cin * T,
        transcendentals=0,
        bytes_accessed=B * Cin * T * it_in + B * Cout * T * it_out
        + Cin * Cout * it_w + Cout * 4,
    )

    kernel = functools.partial(_proj_kernel, compute_dtype=cdt)

    out = pl.pallas_call(
        kernel,
        out_shape=jax.ShapeDtypeStruct((B, Cout, T), out_dtype),
        grid_spec=pltpu.PrefetchScalarGridSpec(
            num_scalar_prefetch=0,
            grid=grid,
            in_specs=[
                # Constant index_map: W and b stay VMEM-resident across the grid.
                pl.BlockSpec((Cout, Cin), lambda ti, bi: (0, 0)),
                pl.BlockSpec((Cout, 1), lambda ti, bi: (0, 0)),
                # Batch dim squeezed; time axis tiled (lane-dense, last dim).
                pl.BlockSpec((None, Cin, tt_eff), lambda ti, bi: (bi, 0, ti)),
            ],
            out_specs=pl.BlockSpec((None, Cout, tt_eff), lambda ti, bi: (bi, 0, ti)),
        ),
        compiler_params=pltpu.CompilerParams(
            dimension_semantics=("parallel", "parallel"),
            vmem_limit_bytes=vmem_limit,
        ),
        cost_estimate=cost,
    )(wt_c, b2, x)
    return out


if __name__ == "__main__":
    # Small shapes consistent with a VC conversion model (channels-first NCT):
    # batch=2, in_channels=32 (bnf dim + F0), time=8, out_channels=16 (mel dim).
    B, C_IN, T, C_OUT = 2, 32, 8, 16

    key = jax.random.PRNGKey(0)
    kx, kw, kb = jax.random.split(key, 3)

    x = jax.random.normal(kx, (B, C_IN, T), dtype=jnp.float32)
    w = jax.random.normal(kw, (C_IN, C_OUT), dtype=jnp.float32) * 0.05
    b = jax.random.normal(kb, (C_OUT,), dtype=jnp.float32) * 0.01

    # f32 path (tiny shape -> single time block per batch element).
    y = conversion_forward(x, w, b)
    jax.block_until_ready(y)
    y_ref = jnp.einsum("bct,co->bot", x, w) + b[None, :, None]
    assert y.shape == (B, C_OUT, T)
    assert jnp.allclose(y, y_ref, atol=1e-5), "mismatch vs f32 reference"

    # bf16 MXU-operand path (cast happens inside the kernel; f32 accumulation).
    y_bf16 = conversion_forward(x, w, b, compute_dtype=jnp.bfloat16)
    jax.block_until_ready(y_bf16)
    assert jnp.allclose(y_bf16, y_ref, atol=5e-2, rtol=5e-2), "mismatch (bf16)"

    # Exercise the tiled, pad-free ragged-tail path (T not a multiple of the tile).
    T2 = 300
    x2 = jax.random.normal(kx, (B, C_IN, T2), dtype=jnp.float32)
    y2 = conversion_forward(x2, w, b, tt=128)
    jax.block_until_ready(y2)
    y2_ref = jnp.einsum("bct,co->bot", x2, w) + b[None, :, None]
    assert y2.shape == (B, C_OUT, T2)
    assert jnp.allclose(y2, y2_ref, atol=1e-5), "mismatch vs reference (tiled)"

    print("KERNEL_OK")
</pallas_src>

<mosaic_0001>
module attributes {stable_mosaic.version = 11 : i64} {
  func.func @_proj_kernel(%arg0: i32, %arg1: i32, %arg2: memref<16x32xf32, #tpu.memory_space<vmem>>, %arg3: memref<16x1xf32, #tpu.memory_space<vmem>>, %arg4: memref<1x32x8xf32, #tpu.memory_space<vmem>>, %arg5: memref<1x16x8xf32, #tpu.memory_space<vmem>>) attributes {dimension_semantics = [#tpu.dimension_semantics<parallel>, #tpu.dimension_semantics<parallel>], iteration_bounds = array<i64: 1, 2>, scalar_prefetch = 0 : i64, scratch_operands = 0 : i64, tpu.core_type = #tpu.core_type<tc>, window_params = [{pipeline_mode = #tpu.pipeline_mode<synchronous>, transform_indices = @transform_0, window_bounds = array<i64: 16, 32>}, {pipeline_mode = #tpu.pipeline_mode<synchronous>, transform_indices = @transform_1, window_bounds = array<i64: 16, 1>}, {transform_indices = @transform_2, window_bounds = array<i64: 1, 32, 8>}, {transform_indices = @transform_3, window_bounds = array<i64: 1, 16, 8>}]} {
    %c0 = arith.constant 0 : index
    %c0_0 = arith.constant 0 : index
    %c0_1 = arith.constant 0 : index
    %0 = vector.load %arg4[%c0, %c0_0, %c0_1] : memref<1x32x8xf32, #tpu.memory_space<vmem>>, vector<1x32x8xf32>
    %1 = vector.shape_cast %0 : vector<1x32x8xf32> to vector<32x8xf32>
    %c0_2 = arith.constant 0 : index
    %c0_3 = arith.constant 0 : index
    %2 = vector.load %arg2[%c0_2, %c0_3] : memref<16x32xf32, #tpu.memory_space<vmem>>, vector<16x32xf32>
    %cst = arith.constant dense<0.000000e+00> : vector<16x8xf32>
    %3 = tpu.matmul %2, %1, %cst {dimension_numbers = #tpu.dot_dimension_numbers<[1], [0], [0], [1], [0, 0, 1, 1], [], []>} : vector<16x32xf32>, vector<32x8xf32>, vector<16x8xf32> -> vector<16x8xf32>
    %c0_4 = arith.constant 0 : index
    %c0_5 = arith.constant 0 : index
    %4 = vector.load %arg3[%c0_4, %c0_5] : memref<16x1xf32, #tpu.memory_space<vmem>>, vector<16x1xf32>
    %5 = vector.broadcast %4 : vector<16x1xf32> to vector<16x8xf32>
    %6 = arith.addf %3, %5 : vector<16x8xf32>
    %c0_6 = arith.constant 0 : index
    %c0_7 = arith.constant 0 : index
    %c0_8 = arith.constant 0 : index
    %7 = vector.load %arg5[%c0_6, %c0_7, %c0_8] : memref<1x16x8xf32, #tpu.memory_space<vmem>>, vector<1x16x8xf32>
    %8 = vector.shape_cast %7 : vector<1x16x8xf32> to vector<16x8xf32>
    %9 = vector.shape_cast %6 : vector<16x8xf32> to vector<1x16x8xf32>
    tpu.vector_store %arg5[%c0_6, %c0_7, %c0_8], %9 {strides = array<i32>} : memref<1x16x8xf32, #tpu.memory_space<vmem>>, vector<1x16x8xf32>,
    return
  }
  func.func @transform_0(%arg0: i32, %arg1: i32) -> (i32, i32) {
    %c0_i32 = arith.constant 0 : i32
    %c0_i32_0 = arith.constant 0 : i32
    %c0_i32_1 = arith.constant 0 : i32
    return %c0_i32, %c0_i32_0 : i32, i32
  }
  func.func @transform_1(%arg0: i32, %arg1: i32) -> (i32, i32) {
    %c0_i32 = arith.constant 0 : i32
    %c0_i32_0 = arith.constant 0 : i32
    %c0_i32_1 = arith.constant 0 : i32
    return %c0_i32, %c0_i32_0 : i32, i32
  }
  func.func @transform_2(%arg0: i32, %arg1: i32) -> (i32, i32, i32) {
    %c0_i32 = arith.constant 0 : i32
    %c0_i32_0 = arith.constant 0 : i32
    return %arg1, %c0_i32, %arg0 : i32, i32, i32
  }
  func.func @transform_3(%arg0: i32, %arg1: i32) -> (i32, i32, i32) {
    %c0_i32 = arith.constant 0 : i32
    %c0_i32_0 = arith.constant 0 : i32
    return %arg1, %c0_i32, %arg0 : i32, i32, i32
  }
}

</mosaic_0001>

<bundles_post_ra>
// kernel: tpu_custom_call.1
= control target key start
LH: loop header
LB: loop body
LE: loop exit
PB: predicated region body
PF: predicated region fallthrough
CT: control target
= control target key end

     0   :  { %s426_s12 = smov 0   ;;  %s428_s13 = smov 0   ;;  %s471_s0 = inlined_call_operand.vmem [shape: f32[16,32], index: 0, kind: input, shape index: {}]   ;;  %s472_s1 = inlined_call_operand.vmem [shape: f32[16,1], index: 1, kind: input, shape index: {}]   ;;  %s473_s2 = inlined_call_operand.vmem [shape: f32[2,32,8], index: 2, kind: input, shape index: {}]   ;;  %s474_s3 = inlined_call_operand.vmem [shape: f32[2,16,8], index: 3, kind: output, shape index: {}]  }
   0x1   :  { %s430_s14 = smov 0  }
   0x2 LB: > { %s22_s15 = sadd.s32 1, %s399_s13  ;;  %p340_p0 = scmp.ge.s32.totalorder %s403_s14, 1  ;;  %s403_s14 = sphi %s430_s14, %s13_s14   ;;  %s399_s13 = sphi %s428_s13, %s476_s13   ;;  %s395_s12 = sphi %s426_s12, %s475_s12  }
   0x3   : > { %p23_p1 = scmp.ge.s32.totalorder %s22_s15, 2  ;;  %p156_p2 = scmp.lt.s32.totalorder %s403_s14, 3 }
   0x5   : > { %s478_s15 = smov (%p23_p1, %s22_s15), 0  ;;  %p157_p3 = pnand %p340_p0, %p156_p2 }
   0x6   : > { %p186_p4 = scmp.lt.s32.totalorder (!%p157_p3), %s395_s12, 1 }
   0x7   : > { %160 = sbr.rel (%p157_p3) target bundleno = 153 (0x99), region = 32 }
   0xc   : > { %v208_v0 = vld [vmem:[%s472_s1] sm:$0xff]  ;;  %v405_v1 = vmov 0   ;;  %s480_s12 = smov (!%p186_p4, %s395_s12), 1  ;;  %v209_v4 = vld [vmem:[%s472_s1 + $0x8] sm:$0xff]  ;;  %vm220_vm0 = vcmask 261120   ;;  %vm250_vm1 = vcmask 64512  }
   0xd   : > { %380 = vset.pattern.permute.xlu0 %v405_v1  ;;  %s349_s18 = sshll.u32 %s480_s12, 5  ;;  %v206_v7 = vld [vmem:[%s471_s0] sm:$0xff]  ;;  %v207_v8 = vld [vmem:[%s471_s0 + $0x8] sm:$0xff]  ;;  %s350_s28 = sshll.u32 %s480_s12, 4 }
   0xe   : > { %212 = vperm.xlu0 %380, %v208_v0   ;;  %s193_s21 = scalar_lea.vmem %s473_s2, %s349_s18  ;;  %s201_s4 = scalar_lea.vmem %s474_s3, %s350_s28 }
   0xf   : > { %v205_v2 = vld [vmem:[%s193_s21 + $0x18] sm:$0xff]  ;;  %v204_v3 = vld [vmem:[%s193_s21 + $0x10] sm:$0xff]  ;;  %v203_v5 = vld [vmem:[%s193_s21 + $0x8] sm:$0xff] }
  0x10   : > { %239 = vmatpush.msra.mxu0 %v205_v2  ;;  %351 = vmatpush.msra.mxu1 %v205_v2  ;;  %v202_v6 = vld [vmem:[%s193_s21] sm:$0xff] }
  0x12   : > { %240 = vmatpush.msra.mxu0 %v204_v3  ;;  %352 = vmatpush.msra.mxu1 %v204_v3 }
  0x14   : > { %241 = vmatpush.msra.mxu0 %v203_v5  ;;  %353 = vmatpush.msra.mxu1 %v203_v5 }
  0x16   : > { %217 = vperm.xlu0 %380, %v209_v4   ;;  %242 = vmatpush.msra.mxu0 %v202_v6 }
  0x17   : > { %354 = vmatpush.msra.mxu1 %v202_v6  ;;  %345 = vmatmul.msk.f32.vlgmr.msra.gmra.mxu0 %vm220_vm0, %v206_v7 }
  0x18   : > { %346 = vmatmul.msk.f32.vlgmr.msra.gmra.mxu1 %vm220_vm0, %v207_v8 }
  0x80   : > { %v213_v9 = vpop.permute.xlu0 %212 }
  0x88   : > { %v218_v10 = vpop.permute.xlu0 %217 }
  0x94   : > { %v244_v11 = vpop.f32.mrf.mxu0 }
  0x95   : > { %v247_v12 = vpop.f32.mrf.mxu1  ;;  %v245_v13 = vadd.f32 %v244_v11, %v213_v9 }
  0x96   : > { %v248_v14 = vadd.f32 %v247_v12, %v218_v10 }
  0x97   : > { %251 = vst.msk [vmem:[%s201_s4] sm:$0xff] %vm250_vm1, %v245_v13 }
  0x98   : > { %252 = vst.msk [vmem:[%s201_s4 + $0x8] sm:$0xff] %vm250_vm1, %v248_v14 }
  0x99 PF: > { %s13_s14 = sadd.s32 1, %s403_s14   ;;  %s475_s12 = smov %s399_s13 }
  0x9a   : > { %p10_p5 = scmp.ge.s32.totalorder %s13_s14, 4   ;;  %s476_s13 = smov %s478_s15 }
  0x9c   :  { %12 = sbr.rel (!%p10_p5) target bundleno = 2 (0x2), region = 62 }

</bundles_post_ra>
